<compile_context>
chip_gen: v7x
topology: tpu7x:2x2x1
jax: 0.10.0
libtpu: 0.0.40
codegen_flags: <defaults>
</compile_context>

<pallas_src>
import numpy as np
import jax
import jax.numpy as jnp
from jax.experimental import pallas as pl
from jax.experimental.pallas import tpu as pltpu


# ----------------------------------------------------------------------------
# Raw (PyTorch-convention) parameters
# ----------------------------------------------------------------------------
def init_params(key, sizes, k, head_size, out_features):
    params = {"conv": []}
    n_conv = len(sizes) - 1
    keys = jax.random.split(key, n_conv + 2)
    for i in range(n_conv):
        cin, cout = sizes[i], sizes[i + 1]
        wkey, bkey = jax.random.split(keys[i])
        fan_in = cin * k * k
        w = jax.random.normal(wkey, (cout, cin, k, k), jnp.float32) / jnp.sqrt(
            float(fan_in))
        b = jax.random.normal(bkey, (cout,), jnp.float32) * 0.01
        params["conv"].append((w, b))
    wkey, bkey = jax.random.split(keys[n_conv])
    params["fc"] = (
        jax.random.normal(wkey, (head_size, sizes[-1]), jnp.float32)
        / jnp.sqrt(float(sizes[-1])),
        jax.random.normal(bkey, (head_size,), jnp.float32) * 0.01,
    )
    wkey, bkey = jax.random.split(keys[n_conv + 1])
    params["head"] = (
        jax.random.normal(wkey, (out_features, head_size), jnp.float32)
        / jnp.sqrt(float(head_size)),
        jax.random.normal(bkey, (out_features,), jnp.float32) * 0.01,
    )
    return params


# ----------------------------------------------------------------------------
# Pack-time helpers: dense per-layer matrices in (h, w, c)-flattened layout
# ----------------------------------------------------------------------------
def conv_toeplitz(wt, H, W, k, stride):
    """Conv2d as a dense (H*W*Cin, OH*OW*Cout) matrix; handles any stride."""
    cout, cin = wt.shape[0], wt.shape[1]
    OH = (H - k) // stride + 1
    OW = (W - k) // stride + 1
    T = np.zeros((H * W * cin, OH * OW * cout), np.float32)
    for oh in range(OH):
        for ow in range(OW):
            col0 = (oh * OW + ow) * cout
            for ki in range(k):
                for kj in range(k):
                    ih, iw = oh * stride + ki, ow * stride + kj
                    row0 = (ih * W + iw) * cin
                    T[row0:row0 + cin, col0:col0 + cout] = wt[:, :, ki, kj].T
    return T, OH, OW


def avgpool_matrix(H, W, C):
    """AvgPool2d(2,2) as a dense (H*W*C, (H//2)*(W//2)*C) matrix."""
    PH, PW = H // 2, W // 2
    P = np.zeros((H * W * C, PH * PW * C), np.float32)
    for ph in range(PH):
        for pw in range(PW):
            c0 = (ph * PW + pw) * C
            for dh in range(2):
                for dw in range(2):
                    r0 = ((2 * ph + dh) * W + (2 * pw + dw)) * C
                    for c in range(C):
                        P[r0 + c, c0 + c] = 0.25
    return P, PH, PW


# ----------------------------------------------------------------------------
# Pack weights once + build the fused Pallas forward
# ----------------------------------------------------------------------------
def pack_and_build(raw, *, batch, height, width, k, stride, sizes, head_size,
                   out_features, add_avg_pool=True):
    """Pre-pack all weights and return a jitted forward(x_nchw) -> (B, out)."""
    n_conv = len(sizes) - 1
    cin0 = sizes[0]

    # Collect per-layer dense matrices: (weight, bias_row_or_None, apply_tanh).
    mats = []
    h, w = height, width
    for i in range(n_conv):
        wt = np.asarray(raw["conv"][i][0], np.float32)     # (Cout, Cin, k, k)
        bias = np.asarray(raw["conv"][i][1], np.float32)   # (Cout,)
        cout = sizes[i + 1]
        T, oh, ow = conv_toeplitz(wt, h, w, k, stride)
        mats.append((T, np.tile(bias, oh * ow), True))      # Conv2d + Tanh
        h, w = oh, ow
        if add_avg_pool and i < n_conv - 1:
            P, ph, pw = avgpool_matrix(h, w, cout)
            mats.append((P, None, True))                     # AvgPool + Tanh
            h, w = ph, pw
    assert h == 1 and w == 1, "config must reduce spatial dims to 1x1 for Flatten"
    # (Flatten of a (C,1,1) NCHW activation equals our (1,1,C) layout: no permute.)

    wfc, bfc = raw["fc"]
    mats.append((np.asarray(wfc, np.float32).T,
                 np.asarray(bfc, np.float32), True))         # Linear + Tanh
    whd, bhd = raw["head"]
    mats.append((np.asarray(whd, np.float32).T,
                 np.asarray(bhd, np.float32), False))        # head Linear

    # Pack all weights into ONE bf16 buffer (16-row aligned blocks) and all
    # biases into ONE f32 buffer -> only 3 input DMAs per call.
    ALIGN = 16  # bf16 sublane packing
    max_cols = max(m[0].shape[1] for m in mats)
    ops, row, n_bias = [], 0, 0
    for wm, bm, do_tanh in mats:
        nr, nc = wm.shape
        brow = None
        if bm is not None:
            brow = n_bias
            n_bias += 1
        ops.append(dict(row=row, nrows=nr, ncols=nc, bias_row=brow, tanh=do_tanh))
        row += -(-nr // ALIGN) * ALIGN

    total_rows = -(-row // ALIGN) * ALIGN
    wbuf_np = np.zeros((total_rows, max_cols), np.float32)
    bbuf_np = np.zeros((max(n_bias, 1), max_cols), np.float32)
    for op, (wm, bm, _) in zip(ops, mats):
        wbuf_np[op["row"]:op["row"] + op["nrows"], :op["ncols"]] = wm
        if bm is not None:
            bbuf_np[op["bias_row"], :op["ncols"]] = bm

    wbuf = jnp.asarray(wbuf_np, jnp.bfloat16)   # bf16 MXU inputs, f32 accumulate
    bbuf = jnp.asarray(bbuf_np, jnp.float32)

    def kernel(x_ref, w_ref, b_ref, o_ref):
        a = x_ref[...]                                        # (B, H*W*Cin0) f32
        for op in ops:                                        # 5 layers, unrolled
            r0, nr, nc = op["row"], op["nrows"], op["ncols"]
            wtile = w_ref[r0:r0 + nr, 0:nc]                   # static VMEM slice
            a = jnp.dot(a.astype(jnp.bfloat16), wtile,
                        preferred_element_type=jnp.float32)   # one MXU matmul
            if op["bias_row"] is not None:
                br = op["bias_row"]
                a = a + b_ref[br:br + 1, 0:nc]                # f32 bias add
            if op["tanh"]:
                a = jnp.tanh(a)                               # f32 EUP tanh
        o_ref[...] = a                                        # (B, out) store

    vmem = pltpu.MemorySpace.VMEM
    fused = pl.pallas_call(
        kernel,
        out_shape=jax.ShapeDtypeStruct((batch, out_features), jnp.float32),
        in_specs=[pl.BlockSpec(memory_space=vmem)] * 3,   # whole arrays in VMEM
        out_specs=pl.BlockSpec(memory_space=vmem),
    )

    @jax.jit
    def forward(x_nchw):
        # single cheap layout op at the boundary: NCHW -> (B, h*w*c) row block
        x2 = jnp.transpose(x_nchw, (0, 2, 3, 1)).reshape(batch,
                                                         height * width * cin0)
        return fused(x2, wbuf, bbuf)

    return forward


# ----------------------------------------------------------------------------
# Pure numpy (float64) reference of the PyTorch module
# ----------------------------------------------------------------------------
def reference_forward_np(raw, x, k, stride, sizes, add_avg_pool=True):
    x = np.asarray(x, np.float64)
    n_conv = len(sizes) - 1
    for i in range(n_conv):
        wt = np.asarray(raw["conv"][i][0], np.float64)
        bias = np.asarray(raw["conv"][i][1], np.float64)
        bsz, cin, hh, ww = x.shape
        cout = wt.shape[0]
        oh = (hh - k) // stride + 1
        ow = (ww - k) // stride + 1
        y = np.zeros((bsz, cout, oh, ow), np.float64)
        for ki in range(k):
            for kj in range(k):
                xs = x[:, :, ki:ki + stride * oh:stride, kj:kj + stride * ow:stride]
                y += np.einsum("bchw,oc->bohw", xs, wt[:, :, ki, kj])
        x = np.tanh(y + bias[None, :, None, None])
        if add_avg_pool and i < n_conv - 1:
            bsz, c, hh, ww = x.shape
            x = np.tanh(x.reshape(bsz, c, hh // 2, 2, ww // 2, 2).mean(axis=(3, 5)))
    wfc, bfc = raw["fc"]
    x = x.reshape(x.shape[0], -1)
    x = np.tanh(x @ np.asarray(wfc, np.float64).T + np.asarray(bfc, np.float64))
    whd, bhd = raw["head"]
    return x @ np.asarray(whd, np.float64).T + np.asarray(bhd, np.float64)


if __name__ == "__main__":
    SIZE, STRIDE = 3, 1
    SIZES = [4, 8, 16]
    HEAD_SIZE = 32
    OUT_FEATURES = 2
    B, H, W = 2, 8, 8   # 8x8 -conv3-> 6x6 -pool-> 3x3 -conv3-> 1x1

    key = jax.random.PRNGKey(0)
    pkey, xkey = jax.random.split(key)
    raw = init_params(pkey, SIZES, SIZE, HEAD_SIZE, OUT_FEATURES)
    x = jax.random.normal(xkey, (B, SIZES[0], H, W), jnp.float32)

    forward = pack_and_build(raw, batch=B, height=H, width=W, k=SIZE,
                             stride=STRIDE, sizes=SIZES, head_size=HEAD_SIZE,
                             out_features=OUT_FEATURES, add_avg_pool=True)

    out = jax.block_until_ready(forward(x))
    assert out.shape == (B, OUT_FEATURES), out.shape
    assert out.dtype == jnp.float32

    ref = reference_forward_np(raw, np.asarray(x), SIZE, STRIDE, SIZES,
                               add_avg_pool=True)
    np.testing.assert_allclose(np.asarray(out, np.float64), ref,
                               rtol=5e-2, atol=5e-2)
    print("KERNEL_OK")
</pallas_src>

<mosaic_0001>
module attributes {stable_mosaic.version = 11 : i64} {
  func.func @kernel(%arg0: memref<2x256xf32, #tpu.memory_space<vmem>>, %arg1: memref<672x288xbf16, #tpu.memory_space<vmem>>, %arg2: memref<4x288xf32, #tpu.memory_space<vmem>>, %arg3: memref<2x2xf32, #tpu.memory_space<vmem>>) attributes {dimension_semantics = [], scalar_prefetch = 0 : i64, scratch_operands = 0 : i64, tpu.core_type = #tpu.core_type<tc>} {
    %c0 = arith.constant 0 : index
    %c0_0 = arith.constant 0 : index
    %0 = vector.load %arg0[%c0, %c0_0] : memref<2x256xf32, #tpu.memory_space<vmem>>, vector<2x256xf32>
    %c0_1 = arith.constant 0 : index
    %c0_2 = arith.constant 0 : index
    %1 = vector.load %arg1[%c0_1, %c0_2] : memref<672x288xbf16, #tpu.memory_space<vmem>>, vector<256x288xbf16>
    %2 = arith.truncf %0 : vector<2x256xf32> to vector<2x256xbf16>
    %cst = arith.constant dense<0.000000e+00> : vector<2x288xf32>
    %3 = tpu.matmul %2, %1, %cst {dimension_numbers = #tpu.dot_dimension_numbers<[1], [0], [0], [1], [0, 0, 1, 1], [], []>} : vector<2x256xbf16>, vector<256x288xbf16>, vector<2x288xf32> -> vector<2x288xf32>
    %c0_3 = arith.constant 0 : index
    %c0_4 = arith.constant 0 : index
    %4 = vector.load %arg2[%c0_3, %c0_4] : memref<4x288xf32, #tpu.memory_space<vmem>>, vector<1x288xf32>
    %5 = vector.broadcast %4 : vector<1x288xf32> to vector<2x288xf32>
    %6 = arith.addf %3, %5 : vector<2x288xf32>
    %7 = math.tanh %6 : vector<2x288xf32>
    %c256 = arith.constant 256 : index
    %c0_5 = arith.constant 0 : index
    %8 = vector.load %arg1[%c256, %c0_5] : memref<672x288xbf16, #tpu.memory_space<vmem>>, vector<288x72xbf16>
    %9 = arith.truncf %7 : vector<2x288xf32> to vector<2x288xbf16>
    %cst_6 = arith.constant dense<0.000000e+00> : vector<2x72xf32>
    %10 = tpu.matmul %9, %8, %cst_6 {dimension_numbers = #tpu.dot_dimension_numbers<[1], [0], [0], [1], [0, 0, 1, 1], [], []>} : vector<2x288xbf16>, vector<288x72xbf16>, vector<2x72xf32> -> vector<2x72xf32>
    %11 = math.tanh %10 : vector<2x72xf32>
    %c544 = arith.constant 544 : index
    %c0_7 = arith.constant 0 : index
    %12 = vector.load %arg1[%c544, %c0_7] : memref<672x288xbf16, #tpu.memory_space<vmem>>, vector<72x16xbf16>
    %13 = arith.truncf %11 : vector<2x72xf32> to vector<2x72xbf16>
    %cst_8 = arith.constant dense<0.000000e+00> : vector<2x16xf32>
    %14 = tpu.matmul %13, %12, %cst_8 {dimension_numbers = #tpu.dot_dimension_numbers<[1], [0], [0], [1], [0, 0, 1, 1], [], []>} : vector<2x72xbf16>, vector<72x16xbf16>, vector<2x16xf32> -> vector<2x16xf32>
    %c1 = arith.constant 1 : index
    %c0_9 = arith.constant 0 : index
    %15 = vector.load %arg2[%c1, %c0_9] : memref<4x288xf32, #tpu.memory_space<vmem>>, vector<1x16xf32>
    %16 = vector.broadcast %15 : vector<1x16xf32> to vector<2x16xf32>
    %17 = arith.addf %14, %16 : vector<2x16xf32>
    %18 = math.tanh %17 : vector<2x16xf32>
    %c624 = arith.constant 624 : index
    %c0_10 = arith.constant 0 : index
    %19 = vector.load %arg1[%c624, %c0_10] : memref<672x288xbf16, #tpu.memory_space<vmem>>, vector<16x32xbf16>
    %20 = arith.truncf %18 : vector<2x16xf32> to vector<2x16xbf16>
    %cst_11 = arith.constant dense<0.000000e+00> : vector<2x32xf32>
    %21 = tpu.matmul %20, %19, %cst_11 {dimension_numbers = #tpu.dot_dimension_numbers<[1], [0], [0], [1], [0, 0, 1, 1], [], []>} : vector<2x16xbf16>, vector<16x32xbf16>, vector<2x32xf32> -> vector<2x32xf32>
    %c2 = arith.constant 2 : index
    %c0_12 = arith.constant 0 : index
    %22 = vector.load %arg2[%c2, %c0_12] : memref<4x288xf32, #tpu.memory_space<vmem>>, vector<1x32xf32>
    %23 = vector.broadcast %22 : vector<1x32xf32> to vector<2x32xf32>
    %24 = arith.addf %21, %23 : vector<2x32xf32>
    %25 = math.tanh %24 : vector<2x32xf32>
    %c640 = arith.constant 640 : index
    %c0_13 = arith.constant 0 : index
    %26 = vector.load %arg1[%c640, %c0_13] : memref<672x288xbf16, #tpu.memory_space<vmem>>, vector<32x2xbf16>
    %27 = arith.truncf %25 : vector<2x32xf32> to vector<2x32xbf16>
    %cst_14 = arith.constant dense<0.000000e+00> : vector<2x2xf32>
    %28 = tpu.matmul %27, %26, %cst_14 {dimension_numbers = #tpu.dot_dimension_numbers<[1], [0], [0], [1], [0, 0, 1, 1], [], []>} : vector<2x32xbf16>, vector<32x2xbf16>, vector<2x2xf32> -> vector<2x2xf32>
    %c3 = arith.constant 3 : index
    %c0_15 = arith.constant 0 : index
    %29 = vector.load %arg2[%c3, %c0_15] : memref<4x288xf32, #tpu.memory_space<vmem>>, vector<1x2xf32>
    %30 = vector.broadcast %29 : vector<1x2xf32> to vector<2x2xf32>
    %31 = arith.addf %28, %30 : vector<2x2xf32>
    %c0_16 = arith.constant 0 : index
    %c0_17 = arith.constant 0 : index
    %32 = vector.load %arg3[%c0_16, %c0_17] : memref<2x2xf32, #tpu.memory_space<vmem>>, vector<2x2xf32>
    tpu.vector_store %arg3[%c0_16, %c0_17], %31 {strides = array<i32>} : memref<2x2xf32, #tpu.memory_space<vmem>>, vector<2x2xf32>,
    return
  }
}

</mosaic_0001>

<bundles_post_ra>
// kernel: forward.1
= control target key start
LH: loop header
LB: loop body
LE: loop exit
PB: predicated region body
PF: predicated region fallthrough
CT: control target
= control target key end

     0   :  { %s1511_s0 = inlined_call_operand.vmem [shape: f32[2,256], index: 0, kind: input, shape index: {}]   ;;  %s1512_s1 = inlined_call_operand.vmem [shape: bf16[672,288], index: 1, kind: input, shape index: {}]   ;;  %s1513_s2 = inlined_call_operand.vmem [shape: f32[4,288], index: 2, kind: input, shape index: {}]   ;;  %s1514_s3 = inlined_call_operand.hbm [shape: f32[2,2], index: 3, kind: output, shape index: {}]  }
   0x1   :  { %v1093_v0 = vld [vmem:[%s1512_s1 + $0x4] ss:$12 sps:$4 sm:$0xff]   ;;  %v1095_v1 = vld [vmem:[%s1512_s1] ss:$12 sps:$4 sm:$0xff]   ;;  %v1096_v2 = vld [vmem:[%s1512_s1 + $0x1c] ss:$12 sps:$4 sm:$0xff]  }
   0x2   :  { %367 = vmatprep.subr.bf16.mxu0 %v1093_v0  ;;  %v1098_v3 = vld [vmem:[%s1512_s1 + $0x18] ss:$12 sps:$4 sm:$0xff]   ;;  %v1099_v4 = vld [vmem:[%s1512_s1 + $0x34] ss:$12 sps:$4 sm:$0xff]   ;;  %v1101_v5 = vld [vmem:[%s1512_s1 + $0x30] ss:$12 sps:$4 sm:$0xff]  }
   0x3   :  { %368 = vmatpush1.bf16.msra.mxu0 %v1095_v1  ;;  %v1102_v6 = vld [vmem:[%s1512_s1 + $0x4c] ss:$12 sps:$4 sm:$0xff]   ;;  %v1104_v7 = vld [vmem:[%s1512_s1 + $0x48] ss:$12 sps:$4 sm:$0xff]   ;;  %v1105_v8 = vld [vmem:[%s1512_s1 + $0x64] ss:$12 sps:$4 sm:$0xff]  }
   0x4   :  { %369 = vmatprep.subr.bf16.mxu0 %v1096_v2  ;;  %v1117_v9 = vld [vmem:[%s1512_s1 + $0xc8] ss:$12 sps:$4 sm:$0xff]   ;;  %v1107_v11 = vld [vmem:[%s1512_s1 + $0x60] ss:$12 sps:$4 sm:$0xff]   ;;  %v1110_v15 = vld [vmem:[%s1512_s1 + $0x78] ss:$12 sps:$4 sm:$0xff]  }
   0x5   :  { %v1118_v10 = vld [vmem:[%s1512_s1 + $0x8] ss:$12 sps:$4 sm:$0xff]   ;;  %996 = vmatprep.subr.bf16.mxu1 %v1117_v9  ;;  %v1122_v12 = vld [vmem:[%s1512_s1 + $0xe0] ss:$12 sps:$4 sm:$0xff]   ;;  %v1127_v16 = vld [vmem:[%s1512_s1 + $0xf8] ss:$12 sps:$4 sm:$0xff]  }
   0x6   :  { %997 = vmatpush3.bf16.msra.mxu1 %v1118_v10  ;;  %v1123_v13 = vld [vmem:[%s1512_s1 + $0x20] ss:$12 sps:$4 sm:$0xff]   ;;  %v1108_v14 = vld [vmem:[%s1512_s1 + $0x7c] ss:$12 sps:$4 sm:$0xff]   ;;  %v1128_v17 = vld [vmem:[%s1512_s1 + $0x38] ss:$12 sps:$4 sm:$0xff]  }
   0x7   :  { %370 = vmatpush1.bf16.msra.mxu0 %v1098_v3  ;;  %998 = vmatprep.subr.bf16.mxu1 %v1122_v12  ;;  %v1111_v18 = vld [vmem:[%s1512_s1 + $0x94] ss:$12 sps:$4 sm:$0xff]   ;;  %v1132_v19 = vld [vmem:[%s1512_s1 + $0x110] ss:$12 sps:$4 sm:$0xff]   ;;  %v1114_v22 = vld [vmem:[%s1512_s1 + $0xac] ss:$12 sps:$4 sm:$0xff]  }
   0x8   :  { %371 = vmatprep.subr.bf16.mxu0 %v1099_v4  ;;  %v1133_v20 = vld [vmem:[%s1512_s1 + $0x50] ss:$12 sps:$4 sm:$0xff]   ;;  %v1137_v23 = vld [vmem:[%s1512_s1 + $0x128] ss:$12 sps:$4 sm:$0xff]   ;;  %v1142_v27 = vld [vmem:[%s1512_s1 + $0x140] ss:$12 sps:$4 sm:$0xff]  }
   0x9   :  { %v1113_v21 = vld [vmem:[%s1512_s1 + $0x90] ss:$12 sps:$4 sm:$0xff]   ;;  %v1116_v24 = vld [vmem:[%s1512_s1 + $0xa8] ss:$12 sps:$4 sm:$0xff]   ;;  %v1121_v28 = vld [vmem:[%s1512_s1 + $0xc0] ss:$12 sps:$4 sm:$0xff]  }
   0xa   :  { %999 = vmatpush3.bf16.msra.mxu1 %v1123_v13  ;;  %v1138_v25 = vld [vmem:[%s1512_s1 + $0x68] ss:$12 sps:$4 sm:$0xff]   ;;  %v1119_v26 = vld [vmem:[%s1512_s1 + $0xc4] ss:$12 sps:$4 sm:$0xff]   ;;  %v1143_v29 = vld [vmem:[%s1512_s1 + $0x80] ss:$12 sps:$4 sm:$0xff]  }
   0xb   :  { %372 = vmatpush1.bf16.msra.mxu0 %v1101_v5  ;;  %1000 = vmatprep.subr.bf16.mxu1 %v1127_v16  ;;  %v1147_v30 = vld [vmem:[%s1512_s1 + $0x158] ss:$12 sps:$4 sm:$0xff]   ;;  %v1124_v31 = vld [vmem:[%s1512_s1 + $0xdc] ss:$12 sps:$4 sm:$0xff]   ;;  %v1129_v35 = vld [vmem:[%s1512_s1 + $0xf4] ss:$12 sps:$4 sm:$0xff]  }
   0xc   :  { %373 = vmatprep.subr.bf16.mxu0 %v1102_v6  ;;  %v1126_v32 = vld [vmem:[%s1512_s1 + $0xd8] ss:$12 sps:$4 sm:$0xff]   ;;  %v1152_v34 = vld [vmem:[%s1512_s1 + $0x170] ss:$12 sps:$4 sm:$0xff]   ;;  %v1157_v42 = vld [vmem:[%s1512_s1 + $0x240] ss:$12 sps:$4 sm:$0xff]  }
   0xd   :  { %v1148_v33 = vld [vmem:[%s1512_s1 + $0x98] ss:$12 sps:$4 sm:$0xff]   ;;  %v1131_v36 = vld [vmem:[%s1512_s1 + $0xf0] ss:$12 sps:$4 sm:$0xff]   ;;  %v1136_v43 = vld [vmem:[%s1512_s1 + $0x108] ss:$12 sps:$4 sm:$0xff]  }
   0xe   :  { %1001 = vmatpush3.bf16.msra.mxu1 %v1128_v17  ;;  %v914_v37 = vld.sshfl [vmem:[%s1511_s0] sm:$0x33 pattern:$0x76325410]  ;;  %v1153_v38 = vld [vmem:[%s1512_s1 + $0xb0] ss:$12 sps:$4 sm:$0xff]  }
   0xf   :  { %374 = vmatpush1.bf16.msra.mxu0 %v1104_v7  ;;  %1002 = vmatprep.subr.bf16.mxu1 %v1132_v19  ;;  %v89_v39 = vcombine.high %v914_v37, %v914_v37  ;;  %v1134_v40 = vld [vmem:[%s1512_s1 + $0x10c] ss:$12 sps:$4 sm:$0xff]   ;;  %v92_v44 = vpack.c.bf16 %v914_v37, %v914_v37  ;;  %v1139_v45 = vld [vmem:[%s1512_s1 + $0x124] ss:$12 sps:$4 sm:$0xff]   ;;  %v1144_v51 = vld [vmem:[%s1512_s1 + $0x13c] ss:$12 sps:$4 sm:$0xff]  }
  0x10   :  { %375 = vmatprep.subr.bf16.mxu0 %v1105_v8  ;;  %v1158_v46 = vld [vmem:[%s1512_s1 + $0x180] ss:$12 sps:$4 sm:$0xff]   ;;  %v1159_v47 = vld [vmem:[%s1512_s1 + $0x258] ss:$12 sps:$4 sm:$0xff]   ;;  %v1161_v50 = vld [vmem:[%s1512_s1 + $0x270] ss:$12 sps:$4 sm:$0xff]  }
  0x11   :  { %v93_v41 = vpack.c.bf16 %v89_v39, %v89_v39  ;;  %v1160_v48 = vld [vmem:[%s1512_s1 + $0x198] ss:$12 sps:$4 sm:$0xff]   ;;  %v1141_v49 = vld [vmem:[%s1512_s1 + $0x120] ss:$12 sps:$4 sm:$0xff]   ;;  %v1162_v52 = vld [vmem:[%s1512_s1 + $0x1b0] ss:$12 sps:$4 sm:$0xff]  }
  0x12   :  { %1003 = vmatpush3.bf16.msra.mxu1 %v1133_v20  ;;  %v1146_v53 = vld [vmem:[%s1512_s1 + $0x138] ss:$12 sps:$4 sm:$0xff]   ;;  %v1149_v54 = vld [vmem:[%s1512_s1 + $0x154] ss:$12 sps:$4 sm:$0xff]   ;;  %v1151_v55 = vld [vmem:[%s1512_s1 + $0x150] ss:$12 sps:$4 sm:$0xff]  }
  0x13   :  { %376 = vmatpush1.bf16.msra.mxu0 %v1107_v11  ;;  %1004 = vmatprep.subr.bf16.mxu1 %v1137_v23  ;;  %v1154_v56 = vld [vmem:[%s1512_s1 + $0x16c] ss:$12 sps:$4 sm:$0xff]  }
  0x14   :  { %377 = vmatprep.subr.bf16.mxu0 %v1108_v14  ;;  %440 = vmatprep.mubr.bf16.mxu1 %v93_v41 }
  0x15   :  { %399 = vmatprep.mubr.bf16.mxu0 %v93_v41 }
  0x16   :  { %1005 = vmatpush3.bf16.msra.mxu1 %v1138_v25 }
  0x17   :  { %378 = vmatpush1.bf16.msra.mxu0 %v1110_v15  ;;  %1006 = vmatprep.subr.bf16.mxu1 %v1142_v27 }
  0x18   :  { %379 = vmatprep.subr.bf16.mxu0 %v1111_v18 }
  0x1a   :  { %1007 = vmatpush3.bf16.msra.mxu1 %v1143_v29 }
  0x1b   :  { %380 = vmatpush1.bf16.msra.mxu0 %v1113_v21  ;;  %1008 = vmatprep.subr.bf16.mxu1 %v1147_v30 }
  0x1c   :  { %381 = vmatprep.subr.bf16.mxu0 %v1114_v22 }
  0x1e   :  { %1009 = vmatpush3.bf16.msra.mxu1 %v1148_v33 }
  0x1f   :  { %382 = vmatpush1.bf16.msra.mxu0 %v1116_v24  ;;  %1010 = vmatprep.subr.bf16.mxu1 %v1152_v34 }
  0x20   :  { %383 = vmatprep.subr.bf16.mxu0 %v1119_v26 }
  0x22   :  { %1011 = vmatpush3.bf16.msra.mxu1 %v1153_v38 }
  0x23   :  { %384 = vmatpush1.bf16.msra.mxu0 %v1121_v28  ;;  %1018 = vmatprep.subr.bf16.mxu1 %v1157_v42 }
  0x24   :  { %385 = vmatprep.subr.bf16.mxu0 %v1124_v31 }
  0x25   :  { %441 = vmatmul.mubr.bf16.vlgmr.msra.gmra.mrb[0].mxu1 %v92_v44 }
  0x26   :  { %1019 = vmatpush3.bf16.msra.mxu1 %v1158_v46 }
  0x27   :  { %386 = vmatpush1.bf16.msra.mxu0 %v1126_v32  ;;  %1020 = vmatprep.subr.bf16.mxu1 %v1159_v47 }
  0x28   :  { %387 = vmatprep.subr.bf16.mxu0 %v1129_v35 }
  0x2a   :  { %1021 = vmatpush3.bf16.msra.mxu1 %v1160_v48 }
  0x2b   :  { %388 = vmatpush1.bf16.msra.mxu0 %v1131_v36  ;;  %1022 = vmatprep.subr.bf16.mxu1 %v1161_v50 }
  0x2c   :  { %389 = vmatprep.subr.bf16.mxu0 %v1134_v40 }
  0x2e   :  { %1023 = vmatpush3.bf16.msra.mxu1 %v1162_v52 }
  0x2f   :  { %390 = vmatpush1.bf16.msra.mxu0 %v1136_v43 }
  0x30   :  { %391 = vmatprep.subr.bf16.mxu0 %v1139_v45 }
  0x33   :  { %392 = vmatpush1.bf16.msra.mxu0 %v1141_v49 }
  0x34   :  { %393 = vmatprep.subr.bf16.mxu0 %v1144_v51 }
  0x37   :  { %394 = vmatpush1.bf16.msra.mxu0 %v1146_v53 }
  0x38   :  { %395 = vmatprep.subr.bf16.mxu0 %v1149_v54 }
  0x39   :  { %8 = vsyncpa [#allocation3], 0  ;;  %v1156_v57 = vld [vmem:[%s1512_s1 + $0x168] ss:$12 sps:$4 sm:$0xff]   ;;  %v1165_v60 = vld [vmem:[%s1512_s1 + $0x2a0] ss:$12 sps:$4 sm:$0xff]   ;;  %v96_v7 = vlaneseq }
  0x3a   :  { %v1163_v58 = vld [vmem:[%s1512_s1 + $0x288] ss:$12 sps:$4 sm:$0xff]   ;;  %v1166_v61 = vld [vmem:[%s1512_s1 + $0x1e0] ss:$12 sps:$4 sm:$0xff]   ;;  %v1167_v62 = vld [vmem:[%s1512_s1 + $0x2b8] ss:$12 sps:$4 sm:$0xff]  }
  0x3b   :  { %396 = vmatpush1.bf16.msra.mxu0 %v1151_v55  ;;  %1024 = vmatprep.subr.bf16.mxu1 %v1163_v58  ;;  %v1164_v59 = vld [vmem:[%s1512_s1 + $0x1c8] ss:$12 sps:$4 sm:$0xff]   ;;  %v1168_v63 = vld [vmem:[%s1512_s1 + $0x1f8] ss:$12 sps:$4 sm:$0xff]   ;;  %v1169_v0 = vld [vmem:[%s1512_s1 + $0x2d0] ss:$12 sps:$4 sm:$0xff]  }
  0x3c   :  { %397 = vmatprep.subr.bf16.mxu0 %v1154_v56  ;;  %1025 = vmatpush3.bf16.msra.mxu1 %v1164_v59  ;;  %v1170_v1 = vld [vmem:[%s1512_s1 + $0x300] ss:$12 sps:$4 sm:$0xff]   ;;  %v1219_v2 = vmov 0.0   ;;  %v1171_v3 = vld [vmem:[%s1512_s1 + $0x210] ss:$12 sps:$4 sm:$0xff]   ;;  %vm1220_vm0 = vmmov 0  }
  0x3d   :  { %1026 = vmatprep.subr.bf16.mxu1 %v1165_v60  ;;  %v1172_v4 = vld [vmem:[%s1512_s1 + $0x2e8] ss:$12 sps:$4 sm:$0xff]   ;;  %v1173_v5 = vld [vmem:[%s1512_s1 + $0x318] ss:$12 sps:$4 sm:$0xff]   ;;  %v97_v8 = vshrl.u32 %v96_v7, 7  ;;  %vm598_vm1 = vcmask 261120  }
  0x3e   :  { %v1174_v6 = vld [vmem:[%s1512_s1 + $0x228] ss:$12 sps:$4 sm:$0xff]   ;;  %v1175_v34 = vld [vmem:[%s1512_s1 + $0x330] ss:$12 sps:$4 sm:$0xff]   ;;  %v1177_v36 = vld [vmem:[%s1512_s1 + $0x360] ss:$12 sps:$4 sm:$0xff]  }
  0x3f   :  { %398 = vmatpush1.bf16.msra.mxu0 %v1156_v57  ;;  %v106_v9 = vsub.s32 2, %v97_v8  ;;  %v94_v10 = vld [vmem:[%s1513_s2] ss:$4 sm:$0x7]  ;;  %v98_v18 = vsub.s32 0, %v97_v8  ;;  %v102_v19 = vsub.s32 1, %v97_v8 }
  0x40   :  { %1027 = vmatpush3.bf16.msra.mxu1 %v1166_v61  ;;  %1054 = vmatprep.subr.bf16.mxu0 %v1219_v2  ;;  %v1176_v35 = vld [vmem:[%s1512_s1 + $0x348] ss:$12 sps:$4 sm:$0xff]   ;;  %v1178_v37 = vld [vmem:[%s1512_s1 + $0x378] ss:$12 sps:$4 sm:$0xff]   ;;  %v1179_v38 = vld [vmem:[%s1512_s1 + $0x390] ss:$0 sps:$4 sm:$0xff]  }
  0x41   :  { %1028 = vmatprep.subr.bf16.mxu1 %v1167_v62  ;;  %v107_v12 = vrot.slane %v94_v10, %v106_v9  ;;  %v99_v22 = vrot.slane %v94_v10, %v98_v18  ;;  %v103_v23 = vrot.slane %v94_v10, %v102_v19  ;;  %vm729_vm2 = vcmask 1043456   ;;  %v1180_v52 = vld [vmem:[%s1512_s1 + $0x3a8] ss:$12 sps:$4 sm:$0xff]   ;;  %v982_v53 = vld [vmem:[%s1513_s2 + $0x1] ss:$0 sm:$0xff] }
  0x42   :  { %400 = vmatmul.mubr.bf16.vlgmr.msra.gmra.mrb[0].mxu0 %v92_v44  ;;  %v731_v39 = vsel %vm729_vm2, %v1179_v38, 0  ;;  %vm725_vm3 = vcmask 588800   ;;  %vm788_vm4 = vcmask 130048   ;;  %v1181_v61 = vld [vmem:[%s1512_s1 + $0x3c0] ss:$12 sps:$4 sm:$0xff]   ;;  %vm898_vm5 = vcmask 9216  }
  0x43   :  { %1055 = vmatpush3.bf16.msra.mxu0 %v1170_v1  ;;  %1058 = vmatprep.mubr.msk.bf16.mxu0 %vm1220_vm0, %v1219_v2  ;;  %v1182_v62 = vld [vmem:[%s1512_s1 + $0x3d8] ss:$12 sps:$4 sm:$0xff]   ;;  %s1221_s1 = smov [#allocation2]  }
  0x44   :  { %1029 = vmatpush3.bf16.msra.mxu1 %v1168_v63  ;;  %1056 = vmatprep.subr.bf16.mxu0 %v1219_v2  ;;  %v989_v63 = vld [vmem:[%s1513_s2 + $0x2] ss:$0 sm:$0xff]  ;;  %s906_s5 = sshll.u32 %s1221_s1, 4  ;;  %s907_s5 = int_to_ptr.vmem [resolvable:$true] %s906_s5 }
  0x45   :  { %1030 = vmatprep.subr.bf16.mxu1 %v1169_v0  ;;  %s1195_s6 = scalar_lea.vmem %s907_s5, 32  ;;  %p1200_p1 = scmp.lt.s32.totalorder %s907_s5, %s907_s5 }
  0x46   :  { %p1196_p0 = scmp.ne.s32.totalorder %s907_s5, %s1195_s6  ;;  %p1201_p2 = scmp.lt.s32.totalorder %s1195_s6, %s1195_s6 }
  0x47   :  { %1057 = vmatpush3.bf16.msra.mxu0 %v1173_v5 }
  0x48   :  { %1031 = vmatpush3.bf16.msra.mxu1 %v1171_v3  ;;  %1076 = vmatprep.subr.bf16.mxu0 %v1219_v2  ;;  %p1202_p3 = por %p1201_p2, %p1200_p1 }
  0x49   :  { %1032 = vmatprep.subr.bf16.mxu1 %v1172_v4 }
  0x4a   :  { %p1203_p4 = pnand %p1202_p3, %p1196_p0 }
  0x4c   :  { %1033 = vmatpush3.bf16.msra.mxu1 %v1174_v6 }
  0x4d   :  { %1062 = vmatprep.subr.bf16.mxu1 %v1219_v2 }
  0xf8   :  { %v1012_v11 = vpop.f32.mrb[0].mxu1 }
  0xf9   :  { %v1013_v13 = vpop.f32.mrb[1].mxu1 }
  0xfa   :  { %v1014_v14 = vadd.f32 %v1013_v13, %v1012_v11  ;;  %v1015_v15 = vpop.f32.mrb[2].mxu1 }
  0xfb   :  { %v1016_v16 = vpop.f32.mrb[3].mxu1 }
  0xfc   :  { %v443_v17 = vadd.f32 %v1014_v14, %v107_v12 }
  0xfe   :  { %1183 = vtanh.f32 %v443_v17 }
 0x108   :  { %v1184_v20 = vpop.eup %1183 }
 0x109   :  { %v489_v21 = vpack.c.bf16 %v1184_v20, %v1184_v20 }
 0x10b   :  { %1059 = vmatmul.mubr.msk.bf16.vlgmr.msra.gmra.mrb[4].mxu0 %vm598_vm1, %v489_v21 }
 0x10c   :  { %1078 = vmatprep.mubr.msk.bf16.mxu0 %vm1220_vm0, %v1219_v2  ;;  %1077 = vmatpush3.bf16.msra.mxu0 %v1180_v52 }
 0x10d   :  { %1082 = vmatprep.subr.bf16.mxu0 %v1219_v2 }
 0x115   :  { %v401_v24 = vpop.f32.mrb[0].mxu0 }
 0x116   :  { %v402_v25 = vadd.f32 %v401_v24, %v99_v22  ;;  %v403_v26 = vpop.f32.mrb[1].mxu0 }
 0x117   :  { %v404_v27 = vadd.f32 %v403_v26, %v103_v23  ;;  %v405_v28 = vpop.f32.mrb[2].mxu0 }
 0x118   :  { %1185 = vtanh.f32 %v402_v25  ;;  %v406_v29 = vpop.f32.mrb[3].mxu0 }
 0x119   :  { %1187 = vtanh.f32 %v404_v27 }
 0x122   :  { %v1186_v30 = vpop.eup %1185 }
 0x123   :  { %v1188_v31 = vpop.eup %1187  ;;  %v487_v33 = vpack.c.bf16 %v1186_v30, %v1186_v30 }
 0x124   :  { %v488_v32 = vpack.c.bf16 %v1188_v31, %v1188_v31 }
 0x126   :  { %634 = vmatprep.mubr.bf16.mxu1 %v488_v32 }
 0x127   :  { %635 = vmatmul.mubr.bf16.vlgmr.msra.gmra.mrb[4].mxu1 %v487_v33 }
 0x128   :  { %1072 = vmatprep.mubr.msk.bf16.mxu1 %vm1220_vm0, %v1219_v2  ;;  %1063 = vmatpush3.bf16.msra.mxu1 %v1175_v34 }
 0x129   :  { %1064 = vmatprep.subr.bf16.mxu1 %v1219_v2 }
 0x12c   :  { %1065 = vmatpush3.bf16.msra.mxu1 %v1176_v35 }
 0x12d   :  { %1066 = vmatprep.subr.bf16.mxu1 %v1219_v2 }
 0x130   :  { %1067 = vmatpush3.bf16.msra.mxu1 %v1177_v36 }
 0x131   :  { %1068 = vmatprep.subr.bf16.mxu1 %v1219_v2 }
 0x134   :  { %1069 = vmatpush3.bf16.msra.mxu1 %v1178_v37 }
 0x135   :  { %1070 = vmatprep.subr.bf16.mxu1 %v1219_v2 }
 0x138   :  { %1071 = vmatpush3.bf16.msra.mxu1 %v731_v39 }
 0x1de   :  { %v676_v40 = vpop.f32.mrb[4].mxu0 }
 0x1df   :  { %v1060_v41 = vpop.f32.mrb[5].mxu0 }
 0x1e0   :  { %v679_v42 = vpop.f32.mrb[6].mxu0 }
 0x1e1   :  { %v1061_v43 = vpop.f32.mrb[7].mxu0 }
 0x1fa   :  { %v1034_v44 = vpop.f32.mrb[4].mxu1 }
 0x1fb   :  { %v1035_v45 = vpop.f32.mrb[5].mxu1 }
 0x1fc   :  { %v1036_v46 = vadd.f32 %v1035_v45, %v1034_v44  ;;  %v1037_v47 = vpop.f32.mrb[6].mxu1 }
 0x1fd   :  { %v1038_v48 = vpop.f32.mrb[7].mxu1 }
 0x1fe   :  { %v677_v49 = vadd.f32 %v1036_v46, %v676_v40 }
 0x200   :  { %1189 = vtanh.f32 %v677_v49 }
 0x20a   :  { %v1190_v50 = vpop.eup %1189 }
 0x20b   :  { %v692_v51 = vpack.c.bf16 %v1190_v50, %v1190_v50 }
 0x20d   :  { %1073 = vmatmul.mubr.msk.bf16.vlgmr.msra.gmra.mrb[8].mxu1 %vm725_vm3, %v692_v51 }
 0x2e0   :  { %v767_v54 = vpop.f32.mrb[8].mxu1 }
 0x2e1   :  { %v768_v55 = vadd.f32 %v982_v53, %v767_v54  ;;  %v1074_v56 = vpop.f32.mrb[9].mxu1 }
 0x2e2   :  { %v770_v57 = vpop.f32.mrb[10].mxu1 }
 0x2e3   :  { %1191 = vtanh.f32 %v768_v55  ;;  %v1075_v58 = vpop.f32.mrb[11].mxu1 }
 0x2ed   :  { %v1192_v59 = vpop.eup %1191 }
 0x2ee   :  { %v776_v60 = vpack.c.bf16 %v1192_v59, %v1192_v59 }
 0x2f0   :  { %1079 = vmatmul.mubr.msk.bf16.vlgmr.msra.gmra.mrb[8].mxu0 %vm788_vm4, %v776_v60 }
 0x2f1   :  { %1086 = vmatprep.mubr.msk.bf16.mxu0 %vm1220_vm0, %v1219_v2  ;;  %1083 = vmatpush3.bf16.msra.mxu0 %v1181_v61 }
 0x2f2   :  { %1084 = vmatprep.subr.bf16.mxu0 %v1219_v2  ;;  %v992_v2 = vld [vmem:[%s1513_s2 + $0x3] ss:$0 sm:$0xff] }
 0x2f5   :  { %1085 = vmatpush3.bf16.msra.mxu0 %v1182_v62 }
 0x3c3   :  { %v826_v0 = vpop.f32.mrb[8].mxu0 }
 0x3c4   :  { %v827_v1 = vadd.f32 %v989_v63, %v826_v0  ;;  %v1080_v3 = vpop.f32.mrb[9].mxu0 }
 0x3c5   :  { %v829_v4 = vpop.f32.mrb[10].mxu0 }
 0x3c6   :  { %1193 = vtanh.f32 %v827_v1  ;;  %v1081_v5 = vpop.f32.mrb[11].mxu0 }
 0x3d0   :  { %v1194_v6 = vpop.eup %1193 }
 0x3d1   :  { %v837_v7 = vpack.c.bf16 %v1194_v6, %v1194_v6 }
 0x3d3   :  { %1087 = vmatmul.mubr.msk.bf16.vlgmr.msra.gmra.mrb[12].mxu0 %vm598_vm1, %v837_v7 }
 0x4a6   :  { %v892_v8 = vpop.f32.mrb[12].mxu0 }
 0x4a7   :  { %v893_v9 = vadd.f32 %v992_v2, %v892_v8  ;;  %v1088_v10 = vpop.f32.mrb[13].mxu0 }
 0x4a8   :  { %v895_v11 = vpop.f32.mrb[14].mxu0 }
 0x4a9   :  { %v1089_v12 = vpop.f32.mrb[15].mxu0  ;;  %899 = vst.msk [vmem:[#allocation2] sm:$0x3] %vm898_vm5, %v893_v9 }
 0x4aa   :  { %1206 = shalt.err (!%p1203_p4)
}
 0x4ab   :  { %s1207_s2 = scalar_lea.hbm %s1514_s3, 32 }
 0x4ac   :  { %p1208_p5 = scmp.ne.s32.totalorder %s1514_s3, %s1207_s2  ;;  %p1211_p6 = scmp.lt.u32.totalorder %s1207_s2, %s1514_s3 }
 0x4ae   :  { %p1213_p7 = pnand %p1211_p6, %p1208_p5 }
 0x4b0   :  { %1216 = shalt.err (!%p1213_p7)
}
 0x4b1   :  { %909 = dma.vmem_to_hbm [thread:$0]  %s907_s5, 32, %s1514_s3, [#allocation3]  }
 0x4b2   :  { %1217 = dma.done.wait [#allocation3], 32  }
 0x4b3   :  { %1218 = vsyncadd [#allocation3], 4294967264 }
 0x4b4   :  { %913 = vsyncpa [#allocation3], 1 }

</bundles_post_ra>
